<compile_context>
chip_gen: v7x
topology: tpu7x:2x2x1
jax: 0.10.0
libtpu: 0.0.40
codegen_flags: <defaults>
</compile_context>

<pallas_src>
import jax
import jax.numpy as jnp
import numpy as np
from jax.experimental import pallas as pl
from jax.experimental.pallas import tpu as pltpu

_INV_SQRT2 = 0.7071067811865476
_LN_EPS = 1e-5


def _round_up(x, m):
    return ((x + m - 1) // m) * m


def _ner2ic_kernel(ic_ref, ner_ref, w1_ref, lnp_ref, w2_ref, b2_ref, out_ref):
    # ic_ref: (TB, S)   ner_ref: (TB, T, D)
    # lnp_ref: (3, H) rows = [b1, gamma, beta]
    TB, S = ic_ref.shape
    H = lnp_ref.shape[1]

    ic = ic_ref[...].astype(jnp.float32)                        # (TB, S)
    ner = ner_ref[...].astype(jnp.float32)                      # (TB, T, D)

    # mean over NER sequence (torch.mean(ner_tokens, dim=1))
    m = jnp.mean(ner, axis=1)                                   # (TB, D)

    # Rank-1 refactor: outer(ic_row, m) @ W1 == outer(ic_row, m @ W1)
    v = jnp.dot(m, w1_ref[...], preferred_element_type=jnp.float32)   # (TB, H)

    b1 = lnp_ref[0:1, :]                                        # (1, H)
    gamma = lnp_ref[1:2, :]
    beta = lnp_ref[2:3, :]

    # h[b, s, :] = ic[b, s] * v[b, :] + b1
    h = ic.reshape(TB, S, 1) * v.reshape(TB, 1, H) + b1.reshape(1, 1, H)  # (TB,S,H)

    # LayerNorm over H (biased variance, matches torch) + exact-erf GELU
    mu = jnp.mean(h, axis=-1, keepdims=True)
    var = jnp.mean((h - mu) * (h - mu), axis=-1, keepdims=True)
    hn = (h - mu) * jax.lax.rsqrt(var + _LN_EPS)
    hn = hn * gamma.reshape(1, 1, H) + beta.reshape(1, 1, H)
    act = 0.5 * hn * (1.0 + jax.lax.erf(hn * _INV_SQRT2))       # (TB, S, H)

    # mean over S, then Lblock_post: Linear(H -> L), no activation
    z = jnp.mean(act, axis=1)                                   # (TB, H)
    out = jnp.dot(z, w2_ref[...], preferred_element_type=jnp.float32) + b2_ref[...]
    out_ref[...] = out.astype(out_ref.dtype)


def ner2ic_forward(ic_tokens, ner_tokens, params, *, block_b=256):
    B, S = ic_tokens.shape
    _, T, D = ner_tokens.shape
    w1 = params["w1"]
    w2 = params["w2"]
    H = w1.shape[1]
    L = w2.shape[1]

    # Fuse LayerNorm affine params + first bias into one resident (3, H) block.
    ln_params = jnp.concatenate(
        [params["b1"].reshape(1, H),
         params["gamma"].reshape(1, H),
         params["beta"].reshape(1, H)], axis=0)
    b2 = params["b2"].reshape(1, L)

    # Batch tile: multiple of 8 (sublane), capped at block_b (256 amortizes the
    # ~0.35us/step overhead; with large B the grid keeps >=2 steps for v7x).
    TB = min(block_b, _round_up(B, 8))
    B_pad = _round_up(B, TB)
    if B_pad != B:
        ic_tokens = jnp.pad(ic_tokens, ((0, B_pad - B), (0, 0)))
        ner_tokens = jnp.pad(ner_tokens, ((0, B_pad - B), (0, 0), (0, 0)))
    grid = (B_pad // TB,)

    cost = pl.CostEstimate(
        flops=int(B_pad * (T * D + 2 * D * H + 10 * S * H + 2 * H * L)),
        transcendentals=int(B_pad * S * H),
        bytes_accessed=int(4 * (B_pad * S + B_pad * T * D + D * H + 3 * H
                                + H * L + L + B_pad * L)),
    )

    grid_spec = pltpu.PrefetchScalarGridSpec(
        num_scalar_prefetch=0,
        grid=grid,
        in_specs=[
            pl.BlockSpec((TB, S), lambda b: (b, 0)),           # ic_tokens
            pl.BlockSpec((TB, T, D), lambda b: (b, 0, 0)),     # ner_tokens
            pl.BlockSpec((D, H), lambda b: (0, 0)),            # W1 (resident)
            pl.BlockSpec((3, H), lambda b: (0, 0)),            # [b1; gamma; beta]
            pl.BlockSpec((H, L), lambda b: (0, 0)),            # W2 (resident)
            pl.BlockSpec((1, L), lambda b: (0, 0)),            # b2
        ],
        out_specs=pl.BlockSpec((TB, L), lambda b: (b, 0)),
    )

    out = pl.pallas_call(
        _ner2ic_kernel,
        out_shape=jax.ShapeDtypeStruct((B_pad, L), jnp.float32),
        grid_spec=grid_spec,
        compiler_params=pltpu.CompilerParams(
            dimension_semantics=("parallel",)),
        cost_estimate=cost,
    )(ic_tokens, ner_tokens, w1, ln_params, w2, b2)
    return out[:B]


def ner2ic_reference(ic_tokens, ner_tokens, params):
    """Pure-JAX reference mirroring the PyTorch forward (eval mode)."""
    w1, b1, gamma, beta, w2, b2 = (params[k] for k in
                                   ("w1", "b1", "gamma", "beta", "w2", "b2"))
    m = jnp.mean(ner_tokens, axis=1, keepdims=True)                     # (B,1,D)
    x = jnp.einsum("bs,bod->bsd", ic_tokens, m)                         # (B,S,D)
    h = jnp.einsum("bsd,dh->bsh", x, w1) + b1                           # (B,S,H)
    mu = jnp.mean(h, axis=-1, keepdims=True)
    var = jnp.mean((h - mu) ** 2, axis=-1, keepdims=True)
    hn = (h - mu) / jnp.sqrt(var + _LN_EPS) * gamma + beta
    act = 0.5 * hn * (1.0 + jax.lax.erf(hn * _INV_SQRT2))
    z = jnp.mean(act, axis=1)                                           # (B,H)
    return jnp.einsum("bh,hl->bl", z, w2) + b2                          # (B,L)


if __name__ == "__main__":
    # Small shapes consistent with the module: dim=32 -> hidden=16, 4 IC labels.
    B, S, T, D = 2, 8, 8, 32
    H, L = D // 2, 4

    key = jax.random.PRNGKey(0)
    k_ic, k_ner, k_w1, k_b1, k_g, k_be, k_w2, k_b2 = jax.random.split(key, 8)

    ic_tokens = jax.random.normal(k_ic, (B, S), dtype=jnp.float32)
    ner_tokens = jax.random.normal(k_ner, (B, T, D), dtype=jnp.float32)

    params = {
        "w1": jax.random.normal(k_w1, (D, H), dtype=jnp.float32) * 0.1,
        "b1": jax.random.normal(k_b1, (1, H), dtype=jnp.float32) * 0.05,
        "gamma": 1.0 + jax.random.normal(k_g, (1, H), dtype=jnp.float32) * 0.05,
        "beta": jax.random.normal(k_be, (1, H), dtype=jnp.float32) * 0.05,
        "w2": jax.random.normal(k_w2, (H, L), dtype=jnp.float32) * 0.1,
        "b2": jax.random.normal(k_b2, (1, L), dtype=jnp.float32) * 0.05,
    }

    out = ner2ic_forward(ic_tokens, ner_tokens, params)
    out = jax.block_until_ready(out)

    ref = jax.block_until_ready(ner2ic_reference(ic_tokens, ner_tokens, params))
    assert out.shape == (B, L), out.shape
    np.testing.assert_allclose(np.asarray(out), np.asarray(ref),
                               rtol=1e-5, atol=5e-5)
    print("KERNEL_OK")
</pallas_src>

<mosaic_0001>
module attributes {stable_mosaic.version = 11 : i64} {
  func.func @_ner2ic_kernel(%arg0: i32, %arg1: memref<8x8xf32, #tpu.memory_space<vmem>>, %arg2: memref<8x8x32xf32, #tpu.memory_space<vmem>>, %arg3: memref<32x16xf32, #tpu.memory_space<vmem>>, %arg4: memref<3x16xf32, #tpu.memory_space<vmem>>, %arg5: memref<16x4xf32, #tpu.memory_space<vmem>>, %arg6: memref<1x4xf32, #tpu.memory_space<vmem>>, %arg7: memref<8x4xf32, #tpu.memory_space<vmem>>) attributes {dimension_semantics = [#tpu.dimension_semantics<parallel>], iteration_bounds = array<i64: 1>, scalar_prefetch = 0 : i64, scratch_operands = 0 : i64, tpu.core_type = #tpu.core_type<tc>, window_params = [{transform_indices = @transform_0, window_bounds = array<i64: 8, 8>}, {transform_indices = @transform_1, window_bounds = array<i64: 8, 8, 32>}, {pipeline_mode = #tpu.pipeline_mode<synchronous>, transform_indices = @transform_2, window_bounds = array<i64: 32, 16>}, {pipeline_mode = #tpu.pipeline_mode<synchronous>, transform_indices = @transform_3, window_bounds = array<i64: 3, 16>}, {pipeline_mode = #tpu.pipeline_mode<synchronous>, transform_indices = @transform_4, window_bounds = array<i64: 16, 4>}, {pipeline_mode = #tpu.pipeline_mode<synchronous>, transform_indices = @transform_5, window_bounds = array<i64: 1, 4>}, {transform_indices = @transform_6, window_bounds = array<i64: 8, 4>}]} {
    %c0 = arith.constant 0 : index
    %c0_0 = arith.constant 0 : index
    %0 = vector.load %arg1[%c0, %c0_0] : memref<8x8xf32, #tpu.memory_space<vmem>>, vector<8x8xf32>
    %c0_1 = arith.constant 0 : index
    %c0_2 = arith.constant 0 : index
    %c0_3 = arith.constant 0 : index
    %1 = vector.load %arg2[%c0_1, %c0_2, %c0_3] : memref<8x8x32xf32, #tpu.memory_space<vmem>>, vector<8x8x32xf32>
    %cst = arith.constant dense<0.000000e+00> : vector<8x32xf32>
    %2 = vector.multi_reduction <add>, %1, %cst [1] : vector<8x8x32xf32> to vector<8x32xf32>
    %cst_4 = arith.constant 8.000000e+00 : f32
    %3 = vector.broadcast %cst_4 : f32 to vector<8x32xf32>
    %4 = arith.divf %2, %3 : vector<8x32xf32>
    %c0_5 = arith.constant 0 : index
    %c0_6 = arith.constant 0 : index
    %5 = vector.load %arg3[%c0_5, %c0_6] : memref<32x16xf32, #tpu.memory_space<vmem>>, vector<32x16xf32>
    %cst_7 = arith.constant dense<0.000000e+00> : vector<8x16xf32>
    %6 = tpu.matmul %4, %5, %cst_7 {dimension_numbers = #tpu.dot_dimension_numbers<[1], [0], [0], [1], [0, 0, 1, 1], [], []>} : vector<8x32xf32>, vector<32x16xf32>, vector<8x16xf32> -> vector<8x16xf32>
    %c0_8 = arith.constant 0 : index
    %c0_9 = arith.constant 0 : index
    %7 = vector.load %arg4[%c0_8, %c0_9] : memref<3x16xf32, #tpu.memory_space<vmem>>, vector<1x16xf32>
    %c1 = arith.constant 1 : index
    %c0_10 = arith.constant 0 : index
    %8 = vector.load %arg4[%c1, %c0_10] : memref<3x16xf32, #tpu.memory_space<vmem>>, vector<1x16xf32>
    %c2 = arith.constant 2 : index
    %c0_11 = arith.constant 0 : index
    %9 = vector.load %arg4[%c2, %c0_11] : memref<3x16xf32, #tpu.memory_space<vmem>>, vector<1x16xf32>
    %10 = vector.shape_cast %0 : vector<8x8xf32> to vector<8x8x1xf32>
    %11 = vector.shape_cast %6 : vector<8x16xf32> to vector<8x1x16xf32>
    %12 = vector.broadcast %10 : vector<8x8x1xf32> to vector<8x8x16xf32>
    %13 = vector.broadcast %11 : vector<8x1x16xf32> to vector<8x8x16xf32>
    %14 = arith.mulf %12, %13 : vector<8x8x16xf32>
    %15 = vector.shape_cast %7 : vector<1x16xf32> to vector<1x1x16xf32>
    %16 = vector.broadcast %15 : vector<1x1x16xf32> to vector<8x8x16xf32>
    %17 = arith.addf %14, %16 : vector<8x8x16xf32>
    %cst_12 = arith.constant dense<0.000000e+00> : vector<8x8xf32>
    %18 = vector.multi_reduction <add>, %17, %cst_12 [2] : vector<8x8x16xf32> to vector<8x8xf32>
    %19 = vector.shape_cast %18 : vector<8x8xf32> to vector<8x8x1xf32>
    %cst_13 = arith.constant 1.600000e+01 : f32
    %20 = vector.broadcast %cst_13 : f32 to vector<8x8x1xf32>
    %21 = arith.divf %19, %20 : vector<8x8x1xf32>
    %22 = vector.broadcast %21 : vector<8x8x1xf32> to vector<8x8x16xf32>
    %23 = arith.subf %17, %22 : vector<8x8x16xf32>
    %24 = vector.broadcast %21 : vector<8x8x1xf32> to vector<8x8x16xf32>
    %25 = arith.subf %17, %24 : vector<8x8x16xf32>
    %26 = arith.mulf %23, %25 : vector<8x8x16xf32>
    %cst_14 = arith.constant dense<0.000000e+00> : vector<8x8xf32>
    %27 = vector.multi_reduction <add>, %26, %cst_14 [2] : vector<8x8x16xf32> to vector<8x8xf32>
    %28 = vector.shape_cast %27 : vector<8x8xf32> to vector<8x8x1xf32>
    %cst_15 = arith.constant 1.600000e+01 : f32
    %29 = vector.broadcast %cst_15 : f32 to vector<8x8x1xf32>
    %30 = arith.divf %28, %29 : vector<8x8x1xf32>
    %31 = vector.broadcast %21 : vector<8x8x1xf32> to vector<8x8x16xf32>
    %32 = arith.subf %17, %31 : vector<8x8x16xf32>
    %cst_16 = arith.constant 9.99999974E-6 : f32
    %33 = vector.broadcast %cst_16 : f32 to vector<8x8x1xf32>
    %34 = arith.addf %30, %33 : vector<8x8x1xf32>
    %35 = math.rsqrt %34 : vector<8x8x1xf32>
    %36 = vector.broadcast %35 : vector<8x8x1xf32> to vector<8x8x16xf32>
    %37 = arith.mulf %32, %36 : vector<8x8x16xf32>
    %38 = vector.shape_cast %8 : vector<1x16xf32> to vector<1x1x16xf32>
    %39 = vector.broadcast %38 : vector<1x1x16xf32> to vector<8x8x16xf32>
    %40 = arith.mulf %37, %39 : vector<8x8x16xf32>
    %41 = vector.shape_cast %9 : vector<1x16xf32> to vector<1x1x16xf32>
    %42 = vector.broadcast %41 : vector<1x1x16xf32> to vector<8x8x16xf32>
    %43 = arith.addf %40, %42 : vector<8x8x16xf32>
    %cst_17 = arith.constant 5.000000e-01 : f32
    %44 = vector.broadcast %cst_17 : f32 to vector<8x8x16xf32>
    %45 = arith.mulf %44, %43 : vector<8x8x16xf32>
    %cst_18 = arith.constant 0.707106769 : f32
    %46 = vector.broadcast %cst_18 : f32 to vector<8x8x16xf32>
    %47 = arith.mulf %43, %46 : vector<8x8x16xf32>
    %48 = math.erf %47 : vector<8x8x16xf32>
    %cst_19 = arith.constant 1.000000e+00 : f32
    %49 = vector.broadcast %cst_19 : f32 to vector<8x8x16xf32>
    %50 = arith.addf %49, %48 : vector<8x8x16xf32>
    %51 = arith.mulf %45, %50 : vector<8x8x16xf32>
    %cst_20 = arith.constant dense<0.000000e+00> : vector<8x16xf32>
    %52 = vector.multi_reduction <add>, %51, %cst_20 [1] : vector<8x8x16xf32> to vector<8x16xf32>
    %cst_21 = arith.constant 8.000000e+00 : f32
    %53 = vector.broadcast %cst_21 : f32 to vector<8x16xf32>
    %54 = arith.divf %52, %53 : vector<8x16xf32>
    %c0_22 = arith.constant 0 : index
    %c0_23 = arith.constant 0 : index
    %55 = vector.load %arg5[%c0_22, %c0_23] : memref<16x4xf32, #tpu.memory_space<vmem>>, vector<16x4xf32>
    %cst_24 = arith.constant dense<0.000000e+00> : vector<8x4xf32>
    %56 = tpu.matmul %54, %55, %cst_24 {dimension_numbers = #tpu.dot_dimension_numbers<[1], [0], [0], [1], [0, 0, 1, 1], [], []>} : vector<8x16xf32>, vector<16x4xf32>, vector<8x4xf32> -> vector<8x4xf32>
    %c0_25 = arith.constant 0 : index
    %c0_26 = arith.constant 0 : index
    %57 = vector.load %arg6[%c0_25, %c0_26] : memref<1x4xf32, #tpu.memory_space<vmem>>, vector<1x4xf32>
    %58 = vector.broadcast %57 : vector<1x4xf32> to vector<8x4xf32>
    %59 = arith.addf %56, %58 : vector<8x4xf32>
    %c0_27 = arith.constant 0 : index
    %c0_28 = arith.constant 0 : index
    %60 = vector.load %arg7[%c0_27, %c0_28] : memref<8x4xf32, #tpu.memory_space<vmem>>, vector<8x4xf32>
    tpu.vector_store %arg7[%c0_27, %c0_28], %59 {strides = array<i32>} : memref<8x4xf32, #tpu.memory_space<vmem>>, vector<8x4xf32>,
    return
  }
  func.func @transform_0(%arg0: i32) -> (i32, i32) {
    %c0_i32 = arith.constant 0 : i32
    %c0_i32_0 = arith.constant 0 : i32
    return %arg0, %c0_i32 : i32, i32
  }
  func.func @transform_1(%arg0: i32) -> (i32, i32, i32) {
    %c0_i32 = arith.constant 0 : i32
    %c0_i32_0 = arith.constant 0 : i32
    %c0_i32_1 = arith.constant 0 : i32
    return %arg0, %c0_i32, %c0_i32_0 : i32, i32, i32
  }
  func.func @transform_2(%arg0: i32) -> (i32, i32) {
    %c0_i32 = arith.constant 0 : i32
    %c0_i32_0 = arith.constant 0 : i32
    %c0_i32_1 = arith.constant 0 : i32
    return %c0_i32, %c0_i32_0 : i32, i32
  }
  func.func @transform_3(%arg0: i32) -> (i32, i32) {
    %c0_i32 = arith.constant 0 : i32
    %c0_i32_0 = arith.constant 0 : i32
    %c0_i32_1 = arith.constant 0 : i32
    return %c0_i32, %c0_i32_0 : i32, i32
  }
  func.func @transform_4(%arg0: i32) -> (i32, i32) {
    %c0_i32 = arith.constant 0 : i32
    %c0_i32_0 = arith.constant 0 : i32
    %c0_i32_1 = arith.constant 0 : i32
    return %c0_i32, %c0_i32_0 : i32, i32
  }
  func.func @transform_5(%arg0: i32) -> (i32, i32) {
    %c0_i32 = arith.constant 0 : i32
    %c0_i32_0 = arith.constant 0 : i32
    %c0_i32_1 = arith.constant 0 : i32
    return %c0_i32, %c0_i32_0 : i32, i32
  }
  func.func @transform_6(%arg0: i32) -> (i32, i32) {
    %c0_i32 = arith.constant 0 : i32
    %c0_i32_0 = arith.constant 0 : i32
    return %arg0, %c0_i32 : i32, i32
  }
}

</mosaic_0001>

<bundles_post_ra>
// kernel: tpu_custom_call.1
= control target key start
LH: loop header
LB: loop body
LE: loop exit
PB: predicated region body
PF: predicated region fallthrough
CT: control target
= control target key end

     0   :  { %11 = vsyncpa [#allocation3], 0  ;;  %s816_s21 = smov [#allocation2]   ;;  %s1041_s0 = inlined_call_operand.hbm [shape: f32[8,8], index: 0, kind: input, shape index: {}]   ;;  %s1042_s1 = inlined_call_operand.vmem [shape: f32[8,8,32], index: 1, kind: input, shape index: {}]   ;;  %s1043_s2 = inlined_call_operand.vmem [shape: f32[32,16], index: 2, kind: input, shape index: {}]   ;;  %s1044_s3 = inlined_call_operand.vmem [shape: f32[3,16], index: 3, kind: input, shape index: {}]   ;;  %s1045_s4 = inlined_call_operand.vmem [shape: f32[16,4], index: 4, kind: input, shape index: {}]   ;;  %s1046_s5 = inlined_call_operand.vmem [shape: f32[1,4], index: 5, kind: input, shape index: {}]   ;;  %s1047_s6 = inlined_call_operand.vmem [shape: f32[8,4], index: 6, kind: output, shape index: {}]  }
   0x1   :  { %s18_s22 = sshll.u32 %s816_s21, 4  ;;  %s792_s25 = scalar_lea.hbm %s1041_s0, 128  ;;  %s19_s22 = int_to_ptr.vmem [resolvable:$true] %s18_s22 }
   0x2   :  { %p793_p0 = scmp.ne.s32.totalorder %s1041_s0, %s792_s25  ;;  %p796_p1 = scmp.lt.u32.totalorder %s792_s25, %s1041_s0 }
   0x4   :  { %p798_p2 = pnand %p796_p1, %p793_p0 }
   0x6   :  { %801 = shalt.err (!%p798_p2)
}
   0x7   :  { %s802_s30 = scalar_lea.vmem %s19_s22, 128  ;;  %p807_p4 = scmp.lt.s32.totalorder %s19_s22, %s19_s22 }
   0x8   :  { %p803_p3 = scmp.ne.s32.totalorder %s19_s22, %s802_s30  ;;  %p808_p5 = scmp.lt.s32.totalorder %s802_s30, %s802_s30 }
   0xa   :  { %p809_p6 = por %p808_p5, %p807_p4 }
   0xc   :  { %p810_p7 = pnand %p809_p6, %p803_p3 }
   0xe   :  { %813 = shalt.err (!%p810_p7)
}
   0xf   :  { %21 = dma.hbm_to_vmem [thread:$0]  %s1041_s0, 128, %s19_s22, [#allocation3]  }
  0x10   :  { %814 = dma.done.wait [#allocation3], 128  }
  0x11   :  { %815 = vsyncadd [#allocation3], 4294967168  ;;  %v817_v0 = vmov 0.0|0.0   ;;  %vm818_vm0 = vmmov 0   ;;  %v819_v1 = vmov 0.0   ;;  %v211_v2 = vlaneseq  ;;  %v110_v4 = vld [vmem:[%s1043_s2] sm:$0xff] }
  0x12   :  { %746 = vmatprep.subr.bf16.mxu0 %v817_v0  ;;  %736 = vmatprep.mubr.msk.f32.mxu0 %vm818_vm0, %v819_v1  ;;  %vm44_vm1 = vcmask 261120   ;;  %v111_v5 = vld [vmem:[%s1043_s2 + $0x8] sm:$0xff]  ;;  %v112_v6 = vld [vmem:[%s1043_s2 + $0x10] sm:$0xff]  ;;  %v113_v8 = vld [vmem:[%s1043_s2 + $0x18] sm:$0xff]  ;;  %vm122_vm2 = vcmask 1041409   ;;  %vm124_vm3 = vcmask 1042434  }
  0x13   :  { %752 = vmatprep.subr.bf16.mxu1 %v817_v0  ;;  %743 = vmatprep.mubr.msk.f32.mxu1 %vm818_vm0, %v819_v1  ;;  %v868_v3 = vshrl.u32 %v211_v2, 7  ;;  %v747_v7 = vpack.c.bf16 %v111_v5, %v110_v4  ;;  %v36_v9 = vld [vmem:[%s1042_s1] sm:$0xff]  ;;  %v37_v10 = vld [vmem:[%s1042_s1 + $0x8] sm:$0xff]  ;;  %v38_v14 = vld [vmem:[%s1042_s1 + $0x10] sm:$0xff]  ;;  %v750_v20 = vpack.c.bf16 %v113_v8, %v112_v6  ;;  %vm126_vm4 = vcmask 1043459  }
  0x14   :  { %v39_v15 = vld [vmem:[%s1042_s1 + $0x18] sm:$0xff]  ;;  %v40_v16 = vld [vmem:[%s1042_s1 + $0x20] sm:$0xff]  ;;  %v45_v17 = vsel %vm44_vm1, %v36_v9, 0.0  ;;  %v52_v18 = vsel %vm44_vm1, %v37_v10, 0.0  ;;  %v41_v21 = vld [vmem:[%s1042_s1 + $0x28] sm:$0xff]  ;;  %v59_v26 = vsel %vm44_vm1, %v38_v14, 0.0 }
  0x15   :  { %v889_v11 = vsub.s32 0, %v868_v3  ;;  %v227_v12 = vsub.s32 2, %v868_v3  ;;  %v220_v13 = vsub.s32 1, %v868_v3  ;;  %v234_v19 = vsub.s32 3, %v868_v3  ;;  %748 = vmatpush3.bf16.msra.mxu0 %v747_v7  ;;  %v42_v22 = vld [vmem:[%s1042_s1 + $0x30] sm:$0xff]  ;;  %v43_v23 = vld [vmem:[%s1042_s1 + $0x38] sm:$0xff] }
  0x16   :  { %v46_v24 = vrot.slane %v45_v17, 4  ;;  %v53_v25 = vrot.slane %v52_v18, 4  ;;  %749 = vmatprep.subr.bf16.mxu0 %v817_v0  ;;  %v60_v27 = vrot.slane %v59_v26, 4  ;;  %v66_v28 = vsel %vm44_vm1, %v39_v15, 0.0  ;;  %v35_v8 = vld [vmem:[#allocation2] sm:$0xff] }
  0x17   :  { %v73_v29 = vsel %vm44_vm1, %v40_v16, 0.0  ;;  %v80_v30 = vsel %vm44_vm1, %v41_v21, 0.0  ;;  %v67_v33 = vrot.slane %v66_v28, 4  ;;  %v87_v37 = vsel %vm44_vm1, %v42_v22, 0.0 }
  0x18   :  { %v47_v31 = vadd.f32 %v46_v24, %v45_v17  ;;  %v54_v32 = vadd.f32 %v53_v25, %v52_v18  ;;  %v74_v34 = vrot.slane %v73_v29, 4  ;;  %v61_v35 = vadd.f32 %v60_v27, %v59_v26 }
  0x19   :  { %v81_v36 = vrot.slane %v80_v30, 4  ;;  %v94_v38 = vsel %vm44_vm1, %v43_v23, 0.0  ;;  %751 = vmatpush3.bf16.msra.mxu0 %v750_v20  ;;  %v68_v41 = vadd.f32 %v67_v33, %v66_v28  ;;  %v88_v45 = vrot.slane %v87_v37, 4 }
  0x1a   :  { %v48_v39 = vrot.slane %v47_v31, 2  ;;  %v55_v40 = vrot.slane %v54_v32, 2  ;;  %v75_v42 = vadd.f32 %v74_v34, %v73_v29  ;;  %v62_v43 = vrot.slane %v61_v35, 2 }
  0x1b   :  { %v82_v44 = vadd.f32 %v81_v36, %v80_v30  ;;  %v95_v46 = vrot.slane %v94_v38, 4  ;;  %v69_v49 = vrot.slane %v68_v41, 2  ;;  %vm128_vm5 = vcmask 1044484  }
  0x1c   :  { %v49_v47 = vadd.f32 %v48_v39, %v47_v31  ;;  %v56_v48 = vadd.f32 %v55_v40, %v54_v32  ;;  %v76_v50 = vrot.slane %v75_v42, 2  ;;  %v63_v51 = vadd.f32 %v62_v43, %v61_v35 }
  0x1d   :  { %v83_v52 = vrot.slane %v82_v44, 2  ;;  %v89_v53 = vadd.f32 %v88_v45, %v87_v37  ;;  %v96_v54 = vadd.f32 %v95_v46, %v94_v38  ;;  %vm130_vm6 = vcmask 1045509  }
  0x1e   :  { %v50_v55 = vrot.slane %v49_v47, 1  ;;  %v57_v56 = vrot.slane %v56_v48, 1  ;;  %v70_v57 = vadd.f32 %v69_v49, %v68_v41  ;;  %v77_v58 = vadd.f32 %v76_v50, %v75_v42 }
  0x1f   :  { %vm132_vm7 = vcmask 1046534   ;;  %v64_v59 = vrot.slane %v63_v51, 1  ;;  %v84_v60 = vadd.f32 %v83_v52, %v82_v44  ;;  %v90_v61 = vrot.slane %v89_v53, 2 }
  0x20   :  { %v97_v62 = vrot.slane %v96_v54, 2  ;;  %v51_v63 = vadd.f32 %v50_v55, %v49_v47  ;;  %v58_v0 = vadd.f32 %v57_v56, %v56_v48  ;;  %v71_v1 = vrot.slane %v70_v57, 1 }
  0x21   :  { %v78_v2 = vrot.slane %v77_v58, 1  ;;  %v65_v4 = vadd.f32 %v64_v59, %v63_v51  ;;  %v85_v5 = vrot.slane %v84_v60, 1  ;;  %v91_v6 = vadd.f32 %v90_v61, %v89_v53 }
  0x22   :  { %v98_v7 = vadd.f32 %v97_v62, %v96_v54  ;;  %v72_v9 = vadd.f32 %v71_v1, %v70_v57  ;;  %v102_v14 = vmul.f32 0.125, %v51_v63  ;;  %v103_v15 = vmul.f32 0.125, %v58_v0 }
  0x23   :  { %v79_v10 = vadd.f32 %v78_v2, %v77_v58  ;;  %v86_v16 = vadd.f32 %v85_v5, %v84_v60  ;;  %v92_v17 = vrot.slane %v91_v6, 1  ;;  %v104_v20 = vmul.f32 0.125, %v65_v4  ;;  %v715_v5 = vld [vmem:[%s1044_s3] ss:$0 sm:$0xff] }
  0x24   :  { %v99_v18 = vrot.slane %v98_v7, 1  ;;  %v105_v21 = vmul.f32 0.125, %v72_v9  ;;  %v123_v23 = vsel %vm122_vm2, %v103_v15, %v102_v14  ;;  %v214_v24 = vrot.slane %v35_v8, %v889_v11 }
  0x25   :  { %v106_v22 = vmul.f32 0.125, %v79_v10  ;;  %v93_v25 = vadd.f32 %v92_v17, %v91_v6  ;;  %v107_v27 = vmul.f32 0.125, %v86_v16  ;;  %v125_v28 = vsel %vm124_vm3, %v104_v20, %v123_v23 }
  0x26   :  { %v100_v26 = vadd.f32 %v99_v18, %v98_v7  ;;  %v127_v29 = vsel %vm126_vm4, %v105_v21, %v125_v28  ;;  %216 = vbcast.lane.b32.xlu0 %v214_v24, 256  ;;  %v228_v30 = vrot.slane %v35_v8, %v227_v12  ;;  %v221_v31 = vrot.slane %v35_v8, %v220_v13 }
  0x27   :  { %v241_v32 = vsub.s32 4, %v868_v3  ;;  %v108_v33 = vmul.f32 0.125, %v93_v25  ;;  %v129_v35 = vsel %vm128_vm5, %v106_v22, %v127_v29  ;;  %vm134_vm8 = vcmask 1047559  }
  0x28   :  { %v109_v34 = vmul.f32 0.125, %v100_v26  ;;  %v131_v36 = vsel %vm130_vm6, %v107_v27, %v129_v35  ;;  %230 = vbcast.lane.b32.xlu1 %v228_v30, 256  ;;  %v235_v37 = vrot.slane %v35_v8, %v234_v19  ;;  %v248_v38 = vsub.s32 5, %v868_v3 }
  0x29   :  { %v133_v12 = vsel %vm132_vm7, %v108_v33, %v131_v36  ;;  %v242_v13 = vrot.slane %v35_v8, %v241_v32  ;;  %v255_v40 = vsub.s32 6, %v868_v3  ;;  %v262_v42 = vsub.s32 7, %v868_v3 }
  0x2a   :  { %v135_v39 = vsel %vm134_vm8, %v109_v34, %v133_v12  ;;  %223 = vbcast.lane.b32.xlu0 %v221_v31, 256  ;;  %v249_v41 = vrot.slane %v35_v8, %v248_v38  ;;  %v820_v44 = vmov 1966171168   ;;  %vm377_vm9 = vcmask 130048  }
  0x2b   :  { %737 = vmatmul.mubr.msk.f32.vlgmr.msra.gmra.mrb[0].mxu0 %vm44_vm1, %v135_v39  ;;  %v256_v43 = vrot.slane %v35_v8, %v255_v40  ;;  %v263_v19 = vrot.slane %v35_v8, %v262_v42  ;;  %v270_v45 = vunpack.c.l.s4 %v820_v44  ;;  %vm707_vm10 = vcmask 31744  }
  0x2c   :  { %237 = vbcast.lane.b32.xlu1 %v235_v37, 256 }
  0x2d   :  { %v271_v47 = vunpack.c.0.s8 %v270_v45 }
  0x2e   :  { %244 = vbcast.lane.b32.xlu0 %v242_v13, 256 }
  0x2f   :  { %v274_v48 = vsub.s32 %v271_v47, %v868_v3 }
  0x30   :  { %251 = vbcast.lane.b32.xlu1 %v249_v41, 256 }
  0x32   :  { %258 = vbcast.lane.b32.xlu0 %v256_v43, 256 }
  0x34   :  { %265 = vbcast.lane.b32.xlu1 %v263_v19, 256 }
  0x98   :  { %v217_v46 = vpop.permute.xlu0 %216 }
  0x9a   :  { %v231_v50 = vpop.permute.xlu1 %230 }
  0x9c   :  { %v224_v49 = vpop.permute.xlu0 %223 }
  0x9e   :  { %v238_v63 = vpop.permute.xlu1 %237 }
  0xa0   :  { %v245_v58 = vpop.permute.xlu0 %244 }
  0xa2   :  { %v252_v21 = vpop.permute.xlu1 %251 }
  0xa4   :  { %v259_v17 = vpop.permute.xlu0 %258 }
  0xa6   :  { %v266_v34 = vpop.permute.xlu1 %265 }
  0xfe   :  { %v204_v51 = vpop.f32.mrb[0].mxu0 }
  0xff   :  { %v268_v52 = vcombine.high %v204_v51, %v204_v51  ;;  %v275_v53 = vrot.slane %v204_v51, %v274_v48  ;;  %v738_v54 = vpop.f32.mrb[1].mxu0 }
 0x101   :  { %v282_v55 = vrot.slane %v268_v52, %v274_v48  ;;  %v283_v56 = vcombine.high %v275_v53, %v275_v53  ;;  %v291_v57 = vrot.slane %v275_v53, %v274_v48 }
 0x103   :  { %v284_v59 = vcombine.high %v282_v55, %v282_v55  ;;  %v320_v60 = vrot.slane %v291_v57, %v889_v11  ;;  %v313_v61 = vcombine.high %v291_v57, %v291_v57  ;;  %v305_v62 = vrot.slane %v283_v56, %v274_v48 }
 0x104   :  { %v298_v0 = vrot.slane %v282_v55, %v274_v48 }
 0x105   :  { %v328_v1 = vrot.slane %v313_v61, %v889_v11  ;;  %v324_v3 = vrot.slane %v305_v62, %v889_v11  ;;  %v315_v2 = vcombine.high %v305_v62, %v305_v62  ;;  %v312_v4 = vrot.slane %v284_v59, %v274_v48 }
 0x106   :  { %v336_v6 = vrot.slane %v298_v0, %v889_v11  ;;  %v314_v7 = vcombine.high %v298_v0, %v298_v0  ;;  %v357_v8 = vmul.f32 %v320_v60, %v217_v46 }
 0x107   :  { %v359_v9 = vmul.f32 %v328_v1, %v231_v50  ;;  %v358_v10 = vmul.f32 %v324_v3, %v224_v49  ;;  %v332_v14 = vrot.slane %v315_v2, %v889_v11  ;;  %v340_v20 = vrot.slane %v312_v4, %v889_v11 }
 0x108   :  { %v361_v15 = vmul.f32 %v336_v6, %v245_v58  ;;  %v344_v16 = vrot.slane %v314_v7, %v889_v11  ;;  %v369_v18 = vadd.f32 %v715_v5, %v357_v8  ;;  %v316_v24 = vcombine.high %v312_v4, %v312_v4 }
 0x109   :  { %v370_v22 = vadd.f32 %v715_v5, %v358_v10  ;;  %v360_v23 = vmul.f32 %v332_v14, %v238_v63  ;;  %v371_v26 = vadd.f32 %v715_v5, %v359_v9  ;;  %v362_v30 = vmul.f32 %v340_v20, %v252_v21  ;;  %v611_v20 = vld [vmem:[%s1045_s4] sm:$0xff]  ;;  %v612_v21 = vld [vmem:[%s1045_s4 + $0x8] sm:$0xff] }
 0x10a   :  { %v378_v25 = vsel %vm377_vm9, %v369_v18, 0.0  ;;  %v363_v27 = vmul.f32 %v344_v16, %v259_v17  ;;  %v373_v29 = vadd.f32 %v715_v5, %v361_v15  ;;  %v348_v31 = vrot.slane %v316_v24, %v889_v11 }
 0x10b   :  { %379 = vadd.xlane.f32.xlu0 %v378_v25  ;;  %v381_v28 = vsel %vm377_vm9, %v370_v22, 0.0  ;;  %v384_v32 = vsel %vm377_vm9, %v371_v26, 0.0  ;;  %v372_v33 = vadd.f32 %v715_v5, %v360_v23  ;;  %v374_v12 = vadd.f32 %v715_v5, %v362_v30 }
 0x10c   :  { %382 = vadd.xlane.f32.xlu1 %v381_v28  ;;  %v390_v35 = vsel %vm377_vm9, %v373_v29, 0.0  ;;  %v375_v36 = vadd.f32 %v715_v5, %v363_v27  ;;  %v364_v37 = vmul.f32 %v348_v31, %v266_v34 }
 0x10d   :  { %v387_v38 = vsel %vm377_vm9, %v372_v33, 0.0  ;;  %v393_v13 = vsel %vm377_vm9, %v374_v12, 0.0 }
 0x10e   :  { %v396_v39 = vsel %vm377_vm9, %v375_v36, 0.0  ;;  %v376_v11 = vadd.f32 %v715_v5, %v364_v37 }
 0x10f   :  { %385 = vadd.xlane.f32.xlu0 %v384_v32 }
 0x110   :  { %391 = vadd.xlane.f32.xlu1 %v390_v35  ;;  %v399_v40 = vsel %vm377_vm9, %v376_v11, 0.0 }
 0x113   :  { %388 = vadd.xlane.f32.xlu0 %v387_v38 }
 0x114   :  { %397 = vadd.xlane.f32.xlu1 %v396_v39 }
 0x117   :  { %394 = vadd.xlane.f32.xlu0 %v393_v13 }
 0x11b   :  { %400 = vadd.xlane.f32.xlu0 %v399_v40  ;;  %v716_v40 = vld [vmem:[%s1044_s3 + $0x1] ss:$0 sm:$0xff] }
 0x198   :  { %v380_v41 = vpop.xlane.xlu0 %379 }
 0x199   :  { %v403_v42 = vmul.f32 0.0625, %v380_v41  ;;  %v383_v43 = vpop.xlane.xlu1 %382 }
 0x19a   :  { %v404_v19 = vmul.f32 0.0625, %v383_v43 }
 0x19b   :  { %v959_v44 = vsub.f32 %v369_v18, %v403_v42 }
 0x19c   :  { %v961_v45 = vsub.f32 %v370_v22, %v404_v19  ;;  %v386_v46 = vpop.xlane.xlu0 %385  ;;  %v753_v22 = vpack.c.bf16 %v612_v21, %v611_v20 }
 0x19d   :  { %v405_v47 = vmul.f32 0.0625, %v386_v46  ;;  %v392_v48 = vpop.xlane.xlu1 %391  ;;  %v419_v49 = vmul.f32 %v959_v44, %v959_v44 }
 0x19e   :  { %v407_v50 = vmul.f32 0.0625, %v392_v48  ;;  %v420_v51 = vmul.f32 %v961_v45, %v961_v45  ;;  %754 = vmatpush3.bf16.msra.mxu1 %v753_v22 }
 0x19f   :  { %v967_v52 = vsub.f32 %v371_v26, %v405_v47  ;;  %v427_v53 = vsel %vm377_vm9, %v419_v49, 0.0  ;;  %v717_v47 = vld [vmem:[%s1044_s3 + $0x2] ss:$0 sm:$0xff] }
 0x1a0   :  { %v970_v54 = vsub.f32 %v373_v29, %v407_v50  ;;  %428 = vadd.xlane.f32.xlu1 %v427_v53  ;;  %v389_v55 = vpop.xlane.xlu0 %388  ;;  %v430_v56 = vsel %vm377_vm9, %v420_v51, 0.0 }
 0x1a1   :  { %v406_v57 = vmul.f32 0.0625, %v389_v55  ;;  %431 = vadd.xlane.f32.xlu0 %v430_v56  ;;  %v398_v58 = vpop.xlane.xlu1 %397  ;;  %v421_v59 = vmul.f32 %v967_v52, %v967_v52 }
 0x1a2   :  { %v409_v60 = vmul.f32 0.0625, %v398_v58  ;;  %v423_v63 = vmul.f32 %v970_v54, %v970_v54 }
 0x1a3   :  { %v975_v61 = vsub.f32 %v372_v33, %v406_v57  ;;  %v433_v62 = vsel %vm377_vm9, %v421_v59, 0.0 }
 0x1a4   :  { %v980_v0 = vsub.f32 %v375_v36, %v409_v60  ;;  %434 = vadd.xlane.f32.xlu1 %v433_v62  ;;  %v395_v1 = vpop.xlane.xlu0 %394  ;;  %v439_v5 = vsel %vm377_vm9, %v423_v63, 0.0 }
 0x1a5   :  { %v408_v3 = vmul.f32 0.0625, %v395_v1  ;;  %v422_v2 = vmul.f32 %v975_v61, %v975_v61 }
 0x1a6   :  { %v425_v7 = vmul.f32 %v980_v0, %v980_v0 }
 0x1a7   :  { %v984_v4 = vsub.f32 %v374_v12, %v408_v3  ;;  %v436_v6 = vsel %vm377_vm9, %v422_v2, 0.0 }
 0x1a8   :  { %440 = vadd.xlane.f32.xlu1 %v439_v5  ;;  %437 = vadd.xlane.f32.xlu0 %v436_v6  ;;  %v401_v8 = vpop.xlane.xlu0 %400  ;;  %v445_v15 = vsel %vm377_vm9, %v425_v7, 0.0 }
 0x1a9   :  { %v410_v9 = vmul.f32 0.0625, %v401_v8  ;;  %v424_v10 = vmul.f32 %v984_v4, %v984_v4 }
 0x1ab   :  { %v992_v14 = vsub.f32 %v376_v11, %v410_v9  ;;  %v442_v16 = vsel %vm377_vm9, %v424_v10, 0.0 }
 0x1ac   :  { %446 = vadd.xlane.f32.xlu1 %v445_v15  ;;  %443 = vadd.xlane.f32.xlu0 %v442_v16 }
 0x1ad   :  { %v426_v17 = vmul.f32 %v992_v14, %v992_v14 }
 0x1af   :  { %v448_v18 = vsel %vm377_vm9, %v426_v17, 0.0 }
 0x1b0   :  { %449 = vadd.xlane.f32.xlu0 %v448_v18 }
 0x22d   :  { %v429_v23 = vpop.xlane.xlu1 %428 }
 0x22e   :  { %v451_v24 = vmul.f32 0.0625, %v429_v23  ;;  %v432_v25 = vpop.xlane.xlu0 %431 }
 0x22f   :  { %v452_v26 = vmul.f32 0.0625, %v432_v25 }
 0x230   :  { %v459_v27 = vadd.f32 1e-05, %v451_v24 }
 0x231   :  { %v460_v28 = vadd.f32 1e-05, %v452_v26  ;;  %v435_v29 = vpop.xlane.xlu1 %434 }
 0x232   :  { %760 = vrsqrt.f32 %v459_v27  ;;  %v453_v30 = vmul.f32 0.0625, %v435_v29 }
 0x233   :  { %762 = vrsqrt.f32 %v460_v28 }
 0x234   :  { %v461_v31 = vadd.f32 1e-05, %v453_v30 }
 0x235   :  { %v441_v32 = vpop.xlane.xlu1 %440  ;;  %v438_v33 = vpop.xlane.xlu0 %437 }
 0x236   :  { %764 = vrsqrt.f32 %v461_v31  ;;  %v455_v34 = vmul.f32 0.0625, %v441_v32  ;;  %v454_v35 = vmul.f32 0.0625, %v438_v33 }
 0x238   :  { %v463_v36 = vadd.f32 1e-05, %v455_v34  ;;  %v462_v37 = vadd.f32 1e-05, %v454_v35 }
 0x239   :  { %v447_v38 = vpop.xlane.xlu1 %446  ;;  %v444_v12 = vpop.xlane.xlu0 %443 }
 0x23a   :  { %766 = vrsqrt.f32 %v463_v36  ;;  %v457_v39 = vmul.f32 0.0625, %v447_v38  ;;  %v456_v13 = vmul.f32 0.0625, %v444_v12 }
 0x23b   :  { %768 = vrsqrt.f32 %v462_v37 }
 0x23c   :  { %v761_v11 = vpop.eup %760  ;;  %v465_v41 = vadd.f32 1e-05, %v457_v39  ;;  %v464_v42 = vadd.f32 1e-05, %v456_v13 }
 0x23d   :  { %v763_v43 = vpop.eup %762  ;;  %v475_v19 = vmul.f32 %v761_v11, %v959_v44  ;;  %v450_v46 = vpop.xlane.xlu0 %449 }
 0x23e   :  { %v476_v48 = vmul.f32 %v763_v43, %v961_v45  ;;  %770 = vrsqrt.f32 %v465_v41  ;;  %v458_v49 = vmul.f32 0.0625, %v450_v46 }
 0x23f   :  { %v487_v50 = vmul.f32 %v716_v40, %v475_v19  ;;  %772 = vrsqrt.f32 %v464_v42 }
 0x240   :  { %v765_v51 = vpop.eup %764  ;;  %v488_v53 = vmul.f32 %v716_v40, %v476_v48  ;;  %v466_v55 = vadd.f32 1e-05, %v458_v49 }
 0x241   :  { %v499_v56 = vadd.f32 %v717_v47, %v487_v50  ;;  %v477_v57 = vmul.f32 %v765_v51, %v967_v52 }
 0x242   :  { %v500_v58 = vadd.f32 %v717_v47, %v488_v53  ;;  %774 = vrsqrt.f32 %v466_v55 }
 0x243   :  { %v515_v44 = vmul.f32 0.70710677, %v499_v56  ;;  %v489_v59 = vmul.f32 %v716_v40, %v477_v57  ;;  %v507_v27 = vmul.f32 0.5, %v499_v56 }
 0x244   :  { %v767_v60 = vpop.eup %766  ;;  %v516_v62 = vmul.f32 0.70710677, %v500_v58  ;;  %v508_v29 = vmul.f32 0.5, %v500_v58 }
 0x245   :  { %v769_v63 = vpop.eup %768  ;;  %776 = verf.f32 %v515_v44  ;;  %v501_v1 = vadd.f32 %v717_v47, %v489_v59  ;;  %v479_v45 = vmul.f32 %v767_v60, %v970_v54 }
 0x246   :  { %778 = verf.f32 %v516_v62  ;;  %v478_v3 = vmul.f32 %v769_v63, %v975_v61 }
 0x247   :  { %v517_v2 = vmul.f32 0.70710677, %v501_v1  ;;  %v491_v5 = vmul.f32 %v716_v40, %v479_v45  ;;  %v509_v35 = vmul.f32 0.5, %v501_v1 }
 0x248   :  { %v771_v6 = vpop.eup %770  ;;  %v490_v7 = vmul.f32 %v716_v40, %v478_v3 }
 0x249   :  { %v773_v8 = vpop.eup %772  ;;  %780 = verf.f32 %v517_v2  ;;  %v503_v52 = vadd.f32 %v717_v47, %v491_v5  ;;  %v481_v9 = vmul.f32 %v771_v6, %v980_v0 }
 0x24a   :  { %v502_v10 = vadd.f32 %v717_v47, %v490_v7  ;;  %v480_v15 = vmul.f32 %v773_v8, %v984_v4 }
 0x24b   :  { %v519_v16 = vmul.f32 0.70710677, %v503_v52  ;;  %v493_v17 = vmul.f32 %v716_v40, %v481_v9  ;;  %v511_v43 = vmul.f32 0.5, %v503_v52 }
 0x24c   :  { %v775_v18 = vpop.eup %774  ;;  %v518_v20 = vmul.f32 0.70710677, %v502_v10  ;;  %v492_v54 = vmul.f32 %v716_v40, %v480_v15  ;;  %v510_v48 = vmul.f32 0.5, %v502_v10 }
 0x24d   :  { %782 = verf.f32 %v519_v16  ;;  %v505_v21 = vadd.f32 %v717_v47, %v493_v17  ;;  %v482_v61 = vmul.f32 %v775_v18, %v992_v14 }
 0x24e   :  { %784 = verf.f32 %v518_v20  ;;  %v504_v22 = vadd.f32 %v717_v47, %v492_v54 }
 0x24f   :  { %v777_v23 = vpop.eup %776  ;;  %v521_v24 = vmul.f32 0.70710677, %v505_v21  ;;  %v494_v25 = vmul.f32 %v716_v40, %v482_v61  ;;  %v513_v57 = vmul.f32 0.5, %v505_v21 }
 0x250   :  { %v779_v26 = vpop.eup %778  ;;  %v531_v0 = vadd.f32 1.0, %v777_v23  ;;  %v520_v28 = vmul.f32 0.70710677, %v504_v22  ;;  %v512_v59 = vmul.f32 0.5, %v504_v22 }
 0x251   :  { %v532_v4 = vadd.f32 1.0, %v779_v26  ;;  %786 = verf.f32 %v521_v24  ;;  %v506_v30 = vadd.f32 %v717_v47, %v494_v25 }
 0x252   :  { %v539_v31 = vmul.f32 %v531_v0, %v507_v27  ;;  %788 = verf.f32 %v520_v28 }
 0x253   :  { %v781_v32 = vpop.eup %780  ;;  %v540_v33 = vmul.f32 %v532_v4, %v508_v29  ;;  %v522_v34 = vmul.f32 0.70710677, %v506_v30  ;;  %v514_v9 = vmul.f32 0.5, %v506_v30 }
 0x254   :  { %v547_v14 = vsel %vm377_vm9, %v539_v31, 0.0  ;;  %v533_v36 = vadd.f32 1.0, %v781_v32 }
 0x255   :  { %v548_v37 = vrot.slane %v547_v14, 4  ;;  %v554_v38 = vsel %vm377_vm9, %v540_v33, 0.0  ;;  %790 = verf.f32 %v522_v34 }
 0x256   :  { %v555_v12 = vrot.slane %v554_v38, 4  ;;  %v541_v39 = vmul.f32 %v533_v36, %v509_v35 }
 0x257   :  { %v783_v13 = vpop.eup %782  ;;  %v549_v11 = vadd.f32 %v548_v37, %v547_v14 }
 0x258   :  { %v785_v40 = vpop.eup %784  ;;  %v556_v41 = vadd.f32 %v555_v12, %v554_v38  ;;  %v561_v42 = vsel %vm377_vm9, %v541_v39, 0.0  ;;  %v535_v19 = vadd.f32 1.0, %v783_v13 }
 0x259   :  { %v550_v46 = vrot.slane %v549_v11, 2  ;;  %v562_v47 = vrot.slane %v561_v42, 4  ;;  %v534_v49 = vadd.f32 1.0, %v785_v40 }
 0x25a   :  { %v557_v50 = vrot.slane %v556_v41, 2  ;;  %v543_v51 = vmul.f32 %v535_v19, %v511_v43 }
 0x25b   :  { %v787_v53 = vpop.eup %786  ;;  %v563_v55 = vadd.f32 %v562_v47, %v561_v42  ;;  %v542_v56 = vmul.f32 %v534_v49, %v510_v48  ;;  %v551_v58 = vadd.f32 %v550_v46, %v549_v11 }
 0x25c   :  { %v789_v44 = vpop.eup %788  ;;  %v537_v60 = vadd.f32 1.0, %v787_v53  ;;  %v558_v62 = vadd.f32 %v557_v50, %v556_v41  ;;  %v575_v63 = vsel %vm377_vm9, %v543_v51, 0.0 }
 0x25d   :  { %v536_v1 = vadd.f32 1.0, %v789_v44  ;;  %v552_v45 = vrot.slane %v551_v58, 1  ;;  %v564_v3 = vrot.slane %v563_v55, 2  ;;  %v568_v2 = vsel %vm377_vm9, %v542_v56, 0.0 }
 0x25e   :  { %v545_v5 = vmul.f32 %v537_v60, %v513_v57  ;;  %v559_v6 = vrot.slane %v558_v62, 1  ;;  %v569_v7 = vrot.slane %v568_v2, 4  ;;  %v576_v8 = vrot.slane %v575_v63, 4 }
 0x25f   :  { %v791_v52 = vpop.eup %790  ;;  %v544_v10 = vmul.f32 %v536_v1, %v512_v59  ;;  %v565_v15 = vadd.f32 %v564_v3, %v563_v55  ;;  %v553_v54 = vadd.f32 %v552_v45, %v551_v58  ;;  %v718_v1 = vld [vmem:[%s1046_s5] ss:$0 sm:$0xff] }
 0x260   :  { %v538_v16 = vadd.f32 1.0, %v791_v52  ;;  %v560_v17 = vadd.f32 %v559_v6, %v558_v62  ;;  %v570_v18 = vadd.f32 %v569_v7, %v568_v2  ;;  %v577_v20 = vadd.f32 %v576_v8, %v575_v63 }
 0x261   :  { %v566_v21 = vrot.slane %v565_v15, 1  ;;  %v582_v61 = vsel %vm377_vm9, %v544_v10, 0.0  ;;  %v589_v22 = vsel %vm377_vm9, %v545_v5, 0.0  ;;  %v603_v36 = vmul.f32 0.125, %v553_v54 }
 0x262   :  { %v546_v23 = vmul.f32 %v538_v16, %v514_v9  ;;  %v571_v24 = vrot.slane %v570_v18, 2  ;;  %v578_v25 = vrot.slane %v577_v20, 2  ;;  %v583_v26 = vrot.slane %v582_v61, 4 }
 0x263   :  { %v567_v27 = vadd.f32 %v566_v21, %v565_v15  ;;  %v590_v0 = vrot.slane %v589_v22, 4  ;;  %v604_v28 = vmul.f32 0.125, %v560_v17 }
 0x264   :  { %v572_v29 = vadd.f32 %v571_v24, %v570_v18  ;;  %v579_v4 = vadd.f32 %v578_v25, %v577_v20  ;;  %v584_v30 = vadd.f32 %v583_v26, %v582_v61  ;;  %v596_v31 = vsel %vm377_vm9, %v546_v23, 0.0 }
 0x265   :  { %v591_v32 = vadd.f32 %v590_v0, %v589_v22  ;;  %v597_v33 = vrot.slane %v596_v31, 4  ;;  %v605_v12 = vmul.f32 0.125, %v567_v27  ;;  %v628_v40 = vsel %vm122_vm2, %v604_v28, %v603_v36 }
 0x266   :  { %v573_v34 = vrot.slane %v572_v29, 1  ;;  %v580_v14 = vrot.slane %v579_v4, 1  ;;  %v585_v35 = vrot.slane %v584_v30, 2 }
 0x267   :  { %v592_v37 = vrot.slane %v591_v32, 2  ;;  %v598_v38 = vadd.f32 %v597_v33, %v596_v31  ;;  %v629_v49 = vsel %vm124_vm3, %v605_v12, %v628_v40 }
 0x268   :  { %v574_v39 = vadd.f32 %v573_v34, %v572_v29  ;;  %v581_v13 = vadd.f32 %v580_v14, %v579_v4  ;;  %v586_v11 = vadd.f32 %v585_v35, %v584_v30 }
 0x269   :  { %v593_v41 = vadd.f32 %v592_v37, %v591_v32  ;;  %v599_v42 = vrot.slane %v598_v38, 2 }
 0x26a   :  { %v587_v43 = vrot.slane %v586_v11, 1  ;;  %v606_v19 = vmul.f32 0.125, %v574_v39  ;;  %v607_v48 = vmul.f32 0.125, %v581_v13 }
 0x26b   :  { %v594_v46 = vrot.slane %v593_v41, 1  ;;  %v600_v47 = vadd.f32 %v599_v42, %v598_v38 }
 0x26c   :  { %v588_v50 = vadd.f32 %v587_v43, %v586_v11  ;;  %v630_v51 = vsel %vm126_vm4, %v606_v19, %v629_v49 }
 0x26d   :  { %v595_v53 = vadd.f32 %v594_v46, %v593_v41  ;;  %v601_v55 = vrot.slane %v600_v47, 1  ;;  %v631_v44 = vsel %vm128_vm5, %v607_v48, %v630_v51 }
 0x26e   :  { %v608_v56 = vmul.f32 0.125, %v588_v50 }
 0x26f   :  { %v602_v57 = vadd.f32 %v601_v55, %v600_v47  ;;  %v609_v58 = vmul.f32 0.125, %v595_v53 }
 0x270   :  { %v632_v59 = vsel %vm130_vm6, %v608_v56, %v631_v44 }
 0x271   :  { %v610_v60 = vmul.f32 0.125, %v602_v57  ;;  %v633_v62 = vsel %vm132_vm7, %v609_v58, %v632_v59 }
 0x273   :  { %v634_v63 = vsel %vm134_vm8, %v610_v60, %v633_v62 }
 0x274   :  { %744 = vmatmul.mubr.msk.f32.vlgmr.msra.gmra.mrb[0].mxu1 %vm377_vm9, %v634_v63 }
 0x347   :  { %v703_v45 = vpop.f32.mrb[0].mxu1 }
 0x348   :  { %v704_v3 = vadd.f32 %v718_v1, %v703_v45  ;;  %v745_v2 = vpop.f32.mrb[1].mxu1 }
 0x34a   :  { %708 = vst.msk [vmem:[%s1047_s6] sm:$0xff] %vm707_vm10, %v704_v3 }
 0x34b   :  { %713 = vsyncpa [#allocation3], 1 }

</bundles_post_ra>
